<compile_context>
chip_gen: v5e
topology: v5e:2x2
jax: 0.10.0
libtpu: 0.0.40
codegen_flags: <defaults>
</compile_context>

<pallas_src>
import jax
import jax.numpy as jnp
from jax.experimental import pallas as pl
from jax.experimental.pallas import tpu as pltpu

LANE = 128
TB_MAX = 8192          # batch-tile (lane) width; ~160 KiB/step of VMEM (2x buffered)


def _round_up(n, m):
    return ((n + m - 1) // m) * m


def _pyramid_kernel(p_ref, x_ref, o_ref):
    # p_ref: SMEM (11,) = [w1_00,w1_01,w1_02, w1_10,w1_11,w1_12, b1_0,b1_1,
    #                      w2_00,w2_01, b2_0]
    # x_ref: VMEM (3, TB)   batch on lanes
    # o_ref: VMEM (1, TB)
    x = x_ref[...]
    x0 = x[0:1, :]
    x1 = x[1:2, :]
    x2 = x[2:3, :]

    h0 = p_ref[0] * x0 + p_ref[1] * x1 + p_ref[2] * x2 + p_ref[6]
    h1 = p_ref[3] * x0 + p_ref[4] * x1 + p_ref[5] * x2 + p_ref[7]

    a0 = jnp.maximum(h0, 0.0)
    a1 = jnp.maximum(h1, 0.0)

    o_ref[...] = p_ref[8] * a0 + p_ref[9] * a1 + p_ref[10]


@jax.jit
def pyramid_forward(x, w1, b1, w2, b2):
    """x: (B, 3) float32 -> (B, 1) float32, matching PYRAMID.forward."""
    B = x.shape[0]
    tb = max(LANE, min(TB_MAX, _round_up(B, LANE)))
    Bp = _round_up(B, tb)

    # Narrow, lane-dense layout: (3, Bp). Padding touches KBs, not MBs.
    x_t = jnp.zeros((3, Bp), jnp.float32).at[:, :B].set(x.T.astype(jnp.float32))

    # All 11 parameters packed as SMEM scalars.
    params = jnp.concatenate([
        w1.reshape(-1).astype(jnp.float32),   # 6
        b1.reshape(-1).astype(jnp.float32),   # 2
        w2.reshape(-1).astype(jnp.float32),   # 2
        b2.reshape(-1).astype(jnp.float32),   # 1
    ])

    out_p = pl.pallas_call(
        _pyramid_kernel,
        out_shape=jax.ShapeDtypeStruct((1, Bp), jnp.float32),
        grid=(Bp // tb,),
        in_specs=[
            pl.BlockSpec(memory_space=pltpu.MemorySpace.SMEM),   # params
            pl.BlockSpec((3, tb), lambda i: (0, i)),             # x (3, TB)
        ],
        out_specs=pl.BlockSpec((1, tb), lambda i: (0, i)),       # y (1, TB)
        compiler_params=pltpu.CompilerParams(
            dimension_semantics=("parallel",)),
    )(params, x_t)

    return out_p[0, :B].reshape(B, 1)


def make_params():
    # Deterministic weights exactly as in PYRAMID.__init__.
    w1 = jnp.array([[-10.0, -11.0, -12.0],
                    [10.0, 11.0, 12.0]], jnp.float32)       # (2, 3)
    b1 = jnp.array([5.0, -25.0], jnp.float32)                # (2,)
    w2 = jnp.array([[1.0, 1.0]], jnp.float32)                # (1, 2)
    b2 = jnp.array([0.0], jnp.float32)                       # (1,)
    return w1, b1, w2, b2


if __name__ == "__main__":
    key = jax.random.PRNGKey(0)
    B = 8
    x = jax.random.normal(key, (B, 3), dtype=jnp.float32)

    w1, b1, w2, b2 = make_params()
    y = pyramid_forward(x, w1, b1, w2, b2)
    jax.block_until_ready(y)

    # Pure-JAX reference check.
    ref = jnp.maximum(x @ w1.T + b1, 0.0) @ w2.T + b2
    assert y.shape == (B, 1)
    assert jnp.allclose(y, ref, atol=1e-5), (y, ref)
    print("KERNEL_OK")
</pallas_src>

<mosaic_0001>
module attributes {stable_mosaic.version = 11 : i64} {
  func.func @_pyramid_kernel(%arg0: i32, %arg1: memref<11xf32, #tpu.memory_space<smem>>, %arg2: memref<3x128xf32, #tpu.memory_space<vmem>>, %arg3: memref<1x128xf32, #tpu.memory_space<vmem>>) attributes {dimension_semantics = [#tpu.dimension_semantics<parallel>], iteration_bounds = array<i64: 1>, scalar_prefetch = 0 : i64, scratch_operands = 0 : i64, tpu.core_type = #tpu.core_type<tc>, window_params = [{transform_indices = @transform_0, window_bounds = array<i64: 11>}, {transform_indices = @transform_1, window_bounds = array<i64: 3, 128>}, {transform_indices = @transform_2, window_bounds = array<i64: 1, 128>}]} {
    %c0 = arith.constant 0 : index
    %c0_0 = arith.constant 0 : index
    %0 = vector.load %arg2[%c0, %c0_0] : memref<3x128xf32, #tpu.memory_space<vmem>>, vector<3x128xf32>
    %1 = vector.extract_strided_slice %0 {offsets = [0, 0], sizes = [1, 128], strides = [1, 1]} : vector<3x128xf32> to vector<1x128xf32>
    %2 = vector.extract_strided_slice %0 {offsets = [1, 0], sizes = [1, 128], strides = [1, 1]} : vector<3x128xf32> to vector<1x128xf32>
    %3 = vector.extract_strided_slice %0 {offsets = [2, 0], sizes = [1, 128], strides = [1, 1]} : vector<3x128xf32> to vector<1x128xf32>
    %c0_1 = arith.constant 0 : index
    %4 = memref.load %arg1[%c0_1] : memref<11xf32, #tpu.memory_space<smem>>
    %5 = vector.broadcast %4 : f32 to vector<1x128xf32>
    %6 = arith.mulf %5, %1 : vector<1x128xf32>
    %c1 = arith.constant 1 : index
    %7 = memref.load %arg1[%c1] : memref<11xf32, #tpu.memory_space<smem>>
    %8 = vector.broadcast %7 : f32 to vector<1x128xf32>
    %9 = arith.mulf %8, %2 : vector<1x128xf32>
    %10 = arith.addf %6, %9 : vector<1x128xf32>
    %c2 = arith.constant 2 : index
    %11 = memref.load %arg1[%c2] : memref<11xf32, #tpu.memory_space<smem>>
    %12 = vector.broadcast %11 : f32 to vector<1x128xf32>
    %13 = arith.mulf %12, %3 : vector<1x128xf32>
    %14 = arith.addf %10, %13 : vector<1x128xf32>
    %c6 = arith.constant 6 : index
    %15 = memref.load %arg1[%c6] : memref<11xf32, #tpu.memory_space<smem>>
    %16 = vector.broadcast %15 : f32 to vector<1x128xf32>
    %17 = arith.addf %14, %16 : vector<1x128xf32>
    %c3 = arith.constant 3 : index
    %18 = memref.load %arg1[%c3] : memref<11xf32, #tpu.memory_space<smem>>
    %19 = vector.broadcast %18 : f32 to vector<1x128xf32>
    %20 = arith.mulf %19, %1 : vector<1x128xf32>
    %c4 = arith.constant 4 : index
    %21 = memref.load %arg1[%c4] : memref<11xf32, #tpu.memory_space<smem>>
    %22 = vector.broadcast %21 : f32 to vector<1x128xf32>
    %23 = arith.mulf %22, %2 : vector<1x128xf32>
    %24 = arith.addf %20, %23 : vector<1x128xf32>
    %c5 = arith.constant 5 : index
    %25 = memref.load %arg1[%c5] : memref<11xf32, #tpu.memory_space<smem>>
    %26 = vector.broadcast %25 : f32 to vector<1x128xf32>
    %27 = arith.mulf %26, %3 : vector<1x128xf32>
    %28 = arith.addf %24, %27 : vector<1x128xf32>
    %c7 = arith.constant 7 : index
    %29 = memref.load %arg1[%c7] : memref<11xf32, #tpu.memory_space<smem>>
    %30 = vector.broadcast %29 : f32 to vector<1x128xf32>
    %31 = arith.addf %28, %30 : vector<1x128xf32>
    %cst = arith.constant 0.000000e+00 : f32
    %32 = vector.broadcast %cst : f32 to vector<1x128xf32>
    %33 = arith.maximumf %17, %32 : vector<1x128xf32>
    %cst_2 = arith.constant 0.000000e+00 : f32
    %34 = vector.broadcast %cst_2 : f32 to vector<1x128xf32>
    %35 = arith.maximumf %31, %34 : vector<1x128xf32>
    %c8 = arith.constant 8 : index
    %36 = memref.load %arg1[%c8] : memref<11xf32, #tpu.memory_space<smem>>
    %37 = vector.broadcast %36 : f32 to vector<1x128xf32>
    %38 = arith.mulf %37, %33 : vector<1x128xf32>
    %c9 = arith.constant 9 : index
    %39 = memref.load %arg1[%c9] : memref<11xf32, #tpu.memory_space<smem>>
    %40 = vector.broadcast %39 : f32 to vector<1x128xf32>
    %41 = arith.mulf %40, %35 : vector<1x128xf32>
    %42 = arith.addf %38, %41 : vector<1x128xf32>
    %c10 = arith.constant 10 : index
    %43 = memref.load %arg1[%c10] : memref<11xf32, #tpu.memory_space<smem>>
    %44 = vector.broadcast %43 : f32 to vector<1x128xf32>
    %45 = arith.addf %42, %44 : vector<1x128xf32>
    %c0_3 = arith.constant 0 : index
    %c0_4 = arith.constant 0 : index
    %46 = vector.load %arg3[%c0_3, %c0_4] : memref<1x128xf32, #tpu.memory_space<vmem>>, vector<1x128xf32>
    tpu.vector_store %arg3[%c0_3, %c0_4], %45 {strides = array<i32>} : memref<1x128xf32, #tpu.memory_space<vmem>>, vector<1x128xf32>,
    return
  }
  func.func @transform_0(%arg0: i32) -> i32 {
    %c0_i32 = arith.constant 0 : i32
    %c0_i32_0 = arith.constant 0 : i32
    return %c0_i32 : i32
  }
  func.func @transform_1(%arg0: i32) -> (i32, i32) {
    %c0_i32 = arith.constant 0 : i32
    %c0_i32_0 = arith.constant 0 : i32
    return %c0_i32, %arg0 : i32, i32
  }
  func.func @transform_2(%arg0: i32) -> (i32, i32) {
    %c0_i32 = arith.constant 0 : i32
    %c0_i32_0 = arith.constant 0 : i32
    return %c0_i32, %arg0 : i32, i32
  }
}

</mosaic_0001>

<bundles_post_ra>
// kernel: pyramid_forward.1
= control target key start
LH: loop header
LB: loop body
LE: loop exit
PB: predicated region body
PF: predicated region fallthrough
CT: control target
= control target key end

     0   :  { %7 = vsyncpa [#allocation3], 0  ;;  %s108_s12 = smov [#allocation2]   ;;  %s133_s0 = inlined_call_operand.vmem [shape: f32[11], index: 0, kind: input, shape index: {}]   ;;  %s134_s1 = inlined_call_operand.vmem [shape: f32[3,128], index: 1, kind: input, shape index: {}]   ;;  %s135_s2 = inlined_call_operand.vmem [shape: f32[1,128], index: 2, kind: output, shape index: {}]  }
   0x1   :  { %s13_s11 = sshll.u32 %s133_s0, 4  ;;  %s14_s11 = int_to_ptr.vmem [resolvable:$true] %s13_s11 }
   0x2   :  { %16 = dma.vmem_to_smem %s14_s11, 16, %s108_s12, [#allocation3]  }
   0x3   :  { %106 = dma.done.wait [#allocation3], 16  }
   0x4   :  { %107 = vsyncadd [#allocation3], 4294967280 }
   0x5   :  { %23 = sfence }
   0x6   :  { %s25_s13 = sld [smem:[#allocation2]]  ;;  %v24_v0 = vld [vmem:[%s134_s1] sm:$0x7] }
   0x7   :  { %s83_s14 = sld [smem:[#allocation2 + $0x1]] }
   0x8   :  { %s84_s15 = sld [smem:[#allocation2 + $0x2]] }
   0x9   :  { %s85_s16 = sld [smem:[#allocation2 + $0x6]] }
   0xa   :  { %s86_s17 = sld [smem:[#allocation2 + $0x3]] }
   0xb   :  { %s87_s20 = sld [smem:[#allocation2 + $0x4]] }
   0xc   :  { %v26_v1 = vstv %s25_s13  ;;  %s88_s21 = sld [smem:[#allocation2 + $0x5]] }
   0xd   :  { %v29_v2 = vstv %s83_s14  ;;  %v27_v3 = vmul.f32 %v26_v1, %v24_v0  ;;  %s89_s0 = sld [smem:[#allocation2 + $0x7]] }
   0xe   :  { %v30_v4 = vmul.f32 %v29_v2, %v24_v0  ;;  %v36_v5 = vstv %s84_s15  ;;  %s90_s22 = sld [smem:[#allocation2 + $0x8]] }
   0xf   :  { %v37_v6 = vmul.f32 %v36_v5, %v24_v0  ;;  %v43_v15 = vstv %s85_s16  ;;  %s91_s1 = sld [smem:[#allocation2 + $0x9]] }
  0x10   :  { %v32_v7 = vrot.slane %v30_v4, 1  ;;  %v46_v8 = vstv %s86_s17  ;;  %s92_s23 = sld [smem:[#allocation2 + $0xa]] }
  0x11   :  { %v39_v9 = vrot.slane %v37_v6, 2  ;;  %v49_v10 = vstv %s87_s20  ;;  %v47_v12 = vmul.f32 %v46_v8, %v24_v0 }
  0x12   :  { %v34_v11 = vadd.f32 %v32_v7, %v27_v3  ;;  %v50_v13 = vmul.f32 %v49_v10, %v24_v0  ;;  %v56_v14 = vstv %s88_s21 }
  0x13   :  { %v57_v16 = vmul.f32 %v56_v14, %v24_v0  ;;  %v63_v22 = vstv %s89_s0 }
  0x14   :  { %v41_v17 = vadd.f32 %v39_v9, %v34_v11  ;;  %v52_v18 = vrot.slane %v50_v13, 1  ;;  %v68_v25 = vstv %s90_s22 }
  0x15   :  { %v59_v19 = vrot.slane %v57_v16, 2  ;;  %v71_v27 = vstv %s91_s1 }
  0x16   :  { %v44_v20 = vadd.f32 %v43_v15, %v41_v17  ;;  %v54_v21 = vadd.f32 %v52_v18, %v47_v12  ;;  %v75_v31 = vstv %s92_s23 }
  0x18   :  { %v61_v23 = vadd.f32 %v59_v19, %v54_v21  ;;  %v65_v24 = vmax.f32 %v44_v20, 0.0 }
  0x1a   :  { %v64_v26 = vadd.f32 %v63_v22, %v61_v23  ;;  %v69_v29 = vmul.f32 %v68_v25, %v65_v24 }
  0x1c   :  { %v66_v28 = vmax.f32 %v64_v26, 0.0 }
  0x1e   :  { %v72_v30 = vmul.f32 %v71_v27, %v66_v28 }
  0x20   :  { %v73_v32 = vadd.f32 %v72_v30, %v69_v29 }
  0x22   :  { %v76_v33 = vadd.f32 %v75_v31, %v73_v32 }
  0x24   :  { %77 = vst [vmem:[%s135_s2] sm:$0x1] %v76_v33 }
  0x25   :  { %82 = vsyncpa [#allocation3], 1 }

</bundles_post_ra>
